<compile_context>
chip_gen: v7x
topology: tpu7x:2x2x1
jax: 0.10.0
libtpu: 0.0.40
codegen_flags: <defaults>
</compile_context>

<pallas_src>
import functools
import math

import jax
import jax.numpy as jnp
from jax.experimental import pallas as pl
from jax.experimental.pallas import tpu as pltpu

_LANE = 128
_ROW_ALIGN = 16          # bf16 sublane packing -> keep row tiles /16
_K_ALIGN = 8
_NEG_INF = -1e9          # bias mask for padded action columns
_MAX_ROW_TILE = 512      # ~85% of HBM roofline per reference measurements


def _round_up(n, m):
    return ((n + m - 1) // m) * m


# ----------------------------------------------------------------------------
# Pallas kernels
# ----------------------------------------------------------------------------
def _mlp_logits(x_ref, w1_ref, b1_ref, w2_ref, b2_ref, w3_ref, b3_ref):
    x = x_ref[...]                                                   # (T, K) bf16
    h1 = jnp.dot(x, w1_ref[...], preferred_element_type=jnp.float32) + b1_ref[...]
    h1 = jnp.maximum(h1, 0.0).astype(jnp.bfloat16)
    h2 = jnp.dot(h1, w2_ref[...], preferred_element_type=jnp.float32) + b2_ref[...]
    h2 = jnp.maximum(h2, 0.0).astype(jnp.bfloat16)
    return jnp.dot(h2, w3_ref[...], preferred_element_type=jnp.float32) + b3_ref[...]


def _pi_probs_kernel(x_ref, w1_ref, b1_ref, w2_ref, b2_ref, w3_ref, b3_ref,
                     probs_ref):
    logits = _mlp_logits(x_ref, w1_ref, b1_ref, w2_ref, b2_ref, w3_ref, b3_ref)
    # numerically-stable softmax; padded action columns carry a ~-1e9 bias so
    # their exp underflows to exactly 0 and the denominator is unaffected.
    m = jnp.max(logits, axis=-1, keepdims=True)
    e = jnp.exp(logits - m)
    denom = jnp.sum(e, axis=-1, keepdims=True)
    # exact divide (approx reciprocal was outside the probs tolerance)
    probs_ref[...] = (e / denom).astype(probs_ref.dtype)


def _pi_action_kernel(x_ref, w1_ref, b1_ref, w2_ref, b2_ref, w3_ref, b3_ref,
                      act_ref):
    logits = _mlp_logits(x_ref, w1_ref, b1_ref, w2_ref, b2_ref, w3_ref, b3_ref)
    # fused greedy action: argmax(logits) == argmax(softmax(logits)); no exp.
    m = jnp.max(logits, axis=-1, keepdims=True)
    col = jax.lax.broadcasted_iota(jnp.float32, logits.shape, 1)
    first_max = jnp.min(jnp.where(logits == m, col, float(logits.shape[-1])),
                        axis=-1, keepdims=True)
    act_ref[...] = first_max.astype(jnp.int32)


# ----------------------------------------------------------------------------
# pallas_call wrappers
# ----------------------------------------------------------------------------
def _pi_pallas(kernel, x_pad, w1, b1, w2, b2, w3, b3, row_tile, out_lanes,
               out_dtype):
    n_pad, s_k = x_pad.shape
    h_pad = w1.shape[1]
    a_pad = w3.shape[1]
    grid = (n_pad // row_tile,)

    def resident(shape):
        # same block every grid step -> weights stay VMEM-resident
        return pl.BlockSpec(shape, lambda i: (0, 0))

    return pl.pallas_call(
        kernel,
        out_shape=jax.ShapeDtypeStruct((n_pad, out_lanes), out_dtype),
        grid=grid,
        in_specs=[
            # last dim == full array dim (state_dim rounded only to 8) -> legal
            pl.BlockSpec((row_tile, s_k), lambda i: (i, 0)),
            resident((s_k, h_pad)), resident((1, h_pad)),
            resident((h_pad, h_pad)), resident((1, h_pad)),
            resident((h_pad, a_pad)), resident((1, a_pad)),
        ],
        out_specs=pl.BlockSpec((row_tile, out_lanes), lambda i: (i, 0)),
        compiler_params=pltpu.CompilerParams(
            dimension_semantics=("parallel",)),
    )(x_pad, w1, b1, w2, b2, w3, b3)


def _row_tile(n):
    # tile ~= round_up(n / ceil(n/512), 16): small batches -> one tight tile
    # (no all-zero tail tiles), large batches -> 512-ish tiles and >=2 grid
    # steps so the "parallel" batch axis can shard across v7x's 2 TCs.
    n = max(int(n), 1)
    n_tiles = math.ceil(n / _MAX_ROW_TILE)
    return _round_up(math.ceil(n / n_tiles), _ROW_ALIGN)


def _pad_x(x, n_pad, s_k):
    n, s = x.shape
    xb = x.astype(jnp.bfloat16)
    if n_pad == n and s_k == s:
        return xb
    return jnp.zeros((n_pad, s_k), jnp.bfloat16).at[:n, :s].set(xb)


@functools.partial(jax.jit, static_argnames=("action_dim",))
def pi_forward_probs(x, w1, b1, w2, b2, w3, b3, *, action_dim):
    """pi(x): action probabilities via the fused MLP+softmax Pallas kernel."""
    n = x.shape[0]
    rt = _row_tile(n)
    n_pad = _round_up(n, rt)
    x_pad = _pad_x(x, n_pad, w1.shape[0])
    probs_pad = _pi_pallas(_pi_probs_kernel, x_pad, w1, b1, w2, b2, w3, b3,
                           rt, w3.shape[1], jnp.float32)
    return probs_pad[:n, :action_dim]


@jax.jit
def pi_forward_action(x, w1, b1, w2, b2, w3, b3):
    """pi.get_action(x): greedy int32 action per row, argmax fused in-kernel."""
    n = x.shape[0]
    rt = _row_tile(n)
    n_pad = _round_up(n, rt)
    x_pad = _pad_x(x, n_pad, w1.shape[0])
    acts_pad = _pi_pallas(_pi_action_kernel, x_pad, w1, b1, w2, b2, w3, b3,
                          rt, 1, jnp.int32)
    return acts_pad[:n, 0]


# ----------------------------------------------------------------------------
# DiscreteSAC wrapper (forward-pass semantics of the PyTorch module)
# ----------------------------------------------------------------------------
class DiscreteSACPallas:
    def __init__(self, state_dim, action_dim, hidden=64, start_steps=10, seed=0):
        self.state_dim = state_dim
        self.action_dim = action_dim
        self.start_steps = start_steps
        self.step = 0

        self.s_k = _round_up(state_dim, _K_ALIGN)     # no 128-lane x padding
        self.h_pad = _round_up(hidden, _LANE)
        self.a_pad = _round_up(action_dim, _LANE)

        key = jax.random.PRNGKey(seed)
        k1, k2, k3, self._rand_key = jax.random.split(key, 4)
        s = 0.05  # deterministic small-scale init
        # weights stored (in_features, out_features), bf16, zero-padded
        self.w1 = jnp.zeros((self.s_k, self.h_pad), jnp.bfloat16).at[
            :state_dim, :hidden].set(
            (jax.random.normal(k1, (state_dim, hidden), jnp.float32) * s
             ).astype(jnp.bfloat16))
        self.b1 = jnp.zeros((1, self.h_pad), jnp.float32)
        self.w2 = jnp.zeros((self.h_pad, self.h_pad), jnp.bfloat16).at[
            :hidden, :hidden].set(
            (jax.random.normal(k2, (hidden, hidden), jnp.float32) * s
             ).astype(jnp.bfloat16))
        self.b2 = jnp.zeros((1, self.h_pad), jnp.float32)
        self.w3 = jnp.zeros((self.h_pad, self.a_pad), jnp.bfloat16).at[
            :hidden, :action_dim].set(
            (jax.random.normal(k3, (hidden, action_dim), jnp.float32) * s
             ).astype(jnp.bfloat16))
        # padded action columns get -1e9 bias -> prob 0, never argmax-selected
        self.b3 = jnp.full((1, self.a_pad), _NEG_INF, jnp.float32).at[
            :, :action_dim].set(0.0)

        # TODO(synk): training-side methods (update, sync_weight, calc_q_target,
        # Adam optimizers, auto-alpha) are optimizer/autograd machinery with no
        # forward-pass Pallas equivalent and are intentionally not implemented.

    def pi_probs(self, x):
        """pi(x): action probabilities (used e.g. by calc_q_target)."""
        return pi_forward_probs(x, self.w1, self.b1, self.w2, self.b2,
                                self.w3, self.b3, action_dim=self.action_dim)

    def pi_get_action(self, x):
        """pi.get_action(x): greedy action per state (int32 device array)."""
        # TODO(synk): canonical SAC acting samples a Categorical; greedy argmax
        # is implemented here (deterministic eval-mode action).
        return pi_forward_action(x, self.w1, self.b1, self.w2, self.b2,
                                 self.w3, self.b3)

    def forward(self, x):
        """Matches DiscreteSAC.forward.

        Returns a device int32 scalar (no forced device->host sync; call
        int(...) on the caller side only if a Python int is truly needed).
        """
        if self.step <= self.start_steps:
            self.step += 1
            key = jax.random.fold_in(self._rand_key, self.step)
            # torch.floor(torch.rand(1) * action_dim).int()[0]
            return jax.random.randint(key, (), 0, self.action_dim,
                                      dtype=jnp.int32)
        return self.pi_get_action(x)[0]


# ----------------------------------------------------------------------------
if __name__ == "__main__":
    STATE_DIM, ACTION_DIM, HIDDEN = 16, 8, 64

    agent = DiscreteSACPallas(STATE_DIM, ACTION_DIM, hidden=HIDDEN,
                              start_steps=0, seed=0)
    agent.step = 1  # skip the random-exploration branch so the kernel runs

    base_key = jax.random.PRNGKey(0)

    # unpadded weight views for the pure-JAX reference (same bf16 weights,
    # same bf16-activation / f32-accumulation recipe as the kernel)
    w1 = agent.w1[:STATE_DIM, :HIDDEN]
    b1 = agent.b1[:, :HIDDEN]
    w2 = agent.w2[:HIDDEN, :HIDDEN]
    b2 = agent.b2[:, :HIDDEN]
    w3 = agent.w3[:HIDDEN, :ACTION_DIM]
    b3 = agent.b3[:, :ACTION_DIM]

    def reference(x):
        xb = x.astype(jnp.bfloat16)
        h1 = jnp.maximum(
            jnp.dot(xb, w1, preferred_element_type=jnp.float32) + b1, 0.0
        ).astype(jnp.bfloat16)
        h2 = jnp.maximum(
            jnp.dot(h1, w2, preferred_element_type=jnp.float32) + b2, 0.0
        ).astype(jnp.bfloat16)
        logits = jnp.dot(h2, w3, preferred_element_type=jnp.float32) + b3
        return jax.nn.softmax(logits, axis=-1), jnp.argmax(
            logits, axis=-1).astype(jnp.int32)

    # batch=8  : single tight tile (row padding only to 16 sublanes)
    # batch=300: single 304-row tile (adaptive tile, no all-zero tail tile)
    # batch=1200: 3 grid steps of 400 rows (pipelined, parallel batch axis)
    for batch in (8, 300, 1200):
        kx = jax.random.fold_in(base_key, batch)
        x = jax.random.normal(kx, (batch, STATE_DIM), jnp.float32)

        probs = jax.block_until_ready(agent.pi_probs(x))
        acts = jax.block_until_ready(agent.pi_get_action(x))

        ref_probs, ref_acts = reference(x)

        assert probs.shape == (batch, ACTION_DIM)
        assert jnp.allclose(probs, ref_probs, atol=2e-3), "probs mismatch"
        assert jnp.allclose(jnp.sum(probs, axis=-1), 1.0, atol=1e-3)
        assert acts.shape == (batch,)
        assert jnp.array_equal(acts, ref_acts), "action mismatch"

    # policy-branch forward: device scalar action
    action = agent.forward(x)
    assert 0 <= int(action) < ACTION_DIM

    # warm-up random-action branch
    explorer = DiscreteSACPallas(STATE_DIM, ACTION_DIM, hidden=HIDDEN,
                                 start_steps=1, seed=1)
    rand_action = explorer.forward(x)
    assert 0 <= int(rand_action) < ACTION_DIM

    print("KERNEL_OK")
</pallas_src>

<mosaic_0001>
module attributes {stable_mosaic.version = 11 : i64} {
  func.func @_pi_probs_kernel(%arg0: i32, %arg1: memref<16x16xbf16, #tpu.memory_space<vmem>>, %arg2: memref<16x128xbf16, #tpu.memory_space<vmem>>, %arg3: memref<1x128xf32, #tpu.memory_space<vmem>>, %arg4: memref<128x128xbf16, #tpu.memory_space<vmem>>, %arg5: memref<1x128xf32, #tpu.memory_space<vmem>>, %arg6: memref<128x128xbf16, #tpu.memory_space<vmem>>, %arg7: memref<1x128xf32, #tpu.memory_space<vmem>>, %arg8: memref<16x128xf32, #tpu.memory_space<vmem>>) attributes {dimension_semantics = [#tpu.dimension_semantics<parallel>], iteration_bounds = array<i64: 1>, scalar_prefetch = 0 : i64, scratch_operands = 0 : i64, tpu.core_type = #tpu.core_type<tc>, window_params = [{transform_indices = @transform_0, window_bounds = array<i64: 16, 16>}, {pipeline_mode = #tpu.pipeline_mode<synchronous>, transform_indices = @transform_1, window_bounds = array<i64: 16, 128>}, {pipeline_mode = #tpu.pipeline_mode<synchronous>, transform_indices = @transform_2, window_bounds = array<i64: 1, 128>}, {pipeline_mode = #tpu.pipeline_mode<synchronous>, transform_indices = @transform_3, window_bounds = array<i64: 128, 128>}, {pipeline_mode = #tpu.pipeline_mode<synchronous>, transform_indices = @transform_4, window_bounds = array<i64: 1, 128>}, {pipeline_mode = #tpu.pipeline_mode<synchronous>, transform_indices = @transform_5, window_bounds = array<i64: 128, 128>}, {pipeline_mode = #tpu.pipeline_mode<synchronous>, transform_indices = @transform_6, window_bounds = array<i64: 1, 128>}, {transform_indices = @transform_7, window_bounds = array<i64: 16, 128>}]} {
    %c0 = arith.constant 0 : index
    %c0_0 = arith.constant 0 : index
    %0 = vector.load %arg1[%c0, %c0_0] : memref<16x16xbf16, #tpu.memory_space<vmem>>, vector<16x16xbf16>
    %c0_1 = arith.constant 0 : index
    %c0_2 = arith.constant 0 : index
    %1 = vector.load %arg2[%c0_1, %c0_2] : memref<16x128xbf16, #tpu.memory_space<vmem>>, vector<16x128xbf16>
    %cst = arith.constant dense<0.000000e+00> : vector<16x128xf32>
    %2 = tpu.matmul %0, %1, %cst {dimension_numbers = #tpu.dot_dimension_numbers<[1], [0], [0], [1], [0, 0, 1, 1], [], []>} : vector<16x16xbf16>, vector<16x128xbf16>, vector<16x128xf32> -> vector<16x128xf32>
    %c0_3 = arith.constant 0 : index
    %c0_4 = arith.constant 0 : index
    %3 = vector.load %arg3[%c0_3, %c0_4] : memref<1x128xf32, #tpu.memory_space<vmem>>, vector<1x128xf32>
    %4 = vector.broadcast %3 : vector<1x128xf32> to vector<16x128xf32>
    %5 = arith.addf %2, %4 : vector<16x128xf32>
    %cst_5 = arith.constant 0.000000e+00 : f32
    %6 = vector.broadcast %cst_5 : f32 to vector<16x128xf32>
    %7 = arith.maximumf %5, %6 : vector<16x128xf32>
    %8 = arith.truncf %7 : vector<16x128xf32> to vector<16x128xbf16>
    %c0_6 = arith.constant 0 : index
    %c0_7 = arith.constant 0 : index
    %9 = vector.load %arg4[%c0_6, %c0_7] : memref<128x128xbf16, #tpu.memory_space<vmem>>, vector<128x128xbf16>
    %cst_8 = arith.constant dense<0.000000e+00> : vector<16x128xf32>
    %10 = tpu.matmul %8, %9, %cst_8 {dimension_numbers = #tpu.dot_dimension_numbers<[1], [0], [0], [1], [0, 0, 1, 1], [], []>} : vector<16x128xbf16>, vector<128x128xbf16>, vector<16x128xf32> -> vector<16x128xf32>
    %c0_9 = arith.constant 0 : index
    %c0_10 = arith.constant 0 : index
    %11 = vector.load %arg5[%c0_9, %c0_10] : memref<1x128xf32, #tpu.memory_space<vmem>>, vector<1x128xf32>
    %12 = vector.broadcast %11 : vector<1x128xf32> to vector<16x128xf32>
    %13 = arith.addf %10, %12 : vector<16x128xf32>
    %cst_11 = arith.constant 0.000000e+00 : f32
    %14 = vector.broadcast %cst_11 : f32 to vector<16x128xf32>
    %15 = arith.maximumf %13, %14 : vector<16x128xf32>
    %16 = arith.truncf %15 : vector<16x128xf32> to vector<16x128xbf16>
    %c0_12 = arith.constant 0 : index
    %c0_13 = arith.constant 0 : index
    %17 = vector.load %arg6[%c0_12, %c0_13] : memref<128x128xbf16, #tpu.memory_space<vmem>>, vector<128x128xbf16>
    %cst_14 = arith.constant dense<0.000000e+00> : vector<16x128xf32>
    %18 = tpu.matmul %16, %17, %cst_14 {dimension_numbers = #tpu.dot_dimension_numbers<[1], [0], [0], [1], [0, 0, 1, 1], [], []>} : vector<16x128xbf16>, vector<128x128xbf16>, vector<16x128xf32> -> vector<16x128xf32>
    %c0_15 = arith.constant 0 : index
    %c0_16 = arith.constant 0 : index
    %19 = vector.load %arg7[%c0_15, %c0_16] : memref<1x128xf32, #tpu.memory_space<vmem>>, vector<1x128xf32>
    %20 = vector.broadcast %19 : vector<1x128xf32> to vector<16x128xf32>
    %21 = arith.addf %18, %20 : vector<16x128xf32>
    %cst_17 = arith.constant dense<0xFF800000> : vector<16xf32>
    %22 = vector.multi_reduction <maximumf>, %21, %cst_17 [1] : vector<16x128xf32> to vector<16xf32>
    %23 = vector.shape_cast %22 : vector<16xf32> to vector<16x1xf32>
    %24 = vector.broadcast %23 : vector<16x1xf32> to vector<16x128xf32>
    %25 = arith.subf %21, %24 : vector<16x128xf32>
    %26 = math.exp %25 : vector<16x128xf32>
    %cst_18 = arith.constant dense<0.000000e+00> : vector<16xf32>
    %27 = vector.multi_reduction <add>, %26, %cst_18 [1] : vector<16x128xf32> to vector<16xf32>
    %28 = vector.shape_cast %27 : vector<16xf32> to vector<16x1xf32>
    %29 = vector.broadcast %28 : vector<16x1xf32> to vector<16x128xf32>
    %30 = arith.divf %26, %29 : vector<16x128xf32>
    %c0_19 = arith.constant 0 : index
    %c0_20 = arith.constant 0 : index
    %31 = vector.load %arg8[%c0_19, %c0_20] : memref<16x128xf32, #tpu.memory_space<vmem>>, vector<16x128xf32>
    tpu.vector_store %arg8[%c0_19, %c0_20], %30 {strides = array<i32>} : memref<16x128xf32, #tpu.memory_space<vmem>>, vector<16x128xf32>,
    return
  }
  func.func @transform_0(%arg0: i32) -> (i32, i32) {
    %c0_i32 = arith.constant 0 : i32
    %c0_i32_0 = arith.constant 0 : i32
    return %arg0, %c0_i32 : i32, i32
  }
  func.func @transform_1(%arg0: i32) -> (i32, i32) {
    %c0_i32 = arith.constant 0 : i32
    %c0_i32_0 = arith.constant 0 : i32
    %c0_i32_1 = arith.constant 0 : i32
    return %c0_i32, %c0_i32_0 : i32, i32
  }
  func.func @transform_2(%arg0: i32) -> (i32, i32) {
    %c0_i32 = arith.constant 0 : i32
    %c0_i32_0 = arith.constant 0 : i32
    %c0_i32_1 = arith.constant 0 : i32
    return %c0_i32, %c0_i32_0 : i32, i32
  }
  func.func @transform_3(%arg0: i32) -> (i32, i32) {
    %c0_i32 = arith.constant 0 : i32
    %c0_i32_0 = arith.constant 0 : i32
    %c0_i32_1 = arith.constant 0 : i32
    return %c0_i32, %c0_i32_0 : i32, i32
  }
  func.func @transform_4(%arg0: i32) -> (i32, i32) {
    %c0_i32 = arith.constant 0 : i32
    %c0_i32_0 = arith.constant 0 : i32
    %c0_i32_1 = arith.constant 0 : i32
    return %c0_i32, %c0_i32_0 : i32, i32
  }
  func.func @transform_5(%arg0: i32) -> (i32, i32) {
    %c0_i32 = arith.constant 0 : i32
    %c0_i32_0 = arith.constant 0 : i32
    %c0_i32_1 = arith.constant 0 : i32
    return %c0_i32, %c0_i32_0 : i32, i32
  }
  func.func @transform_6(%arg0: i32) -> (i32, i32) {
    %c0_i32 = arith.constant 0 : i32
    %c0_i32_0 = arith.constant 0 : i32
    %c0_i32_1 = arith.constant 0 : i32
    return %c0_i32, %c0_i32_0 : i32, i32
  }
  func.func @transform_7(%arg0: i32) -> (i32, i32) {
    %c0_i32 = arith.constant 0 : i32
    %c0_i32_0 = arith.constant 0 : i32
    return %arg0, %c0_i32 : i32, i32
  }
}

</mosaic_0001>

<bundles_post_ra>
// kernel: pi_forward_probs.1
= control target key start
LH: loop header
LB: loop body
LE: loop exit
PB: predicated region body
PF: predicated region fallthrough
CT: control target
= control target key end

     0   :  { %12 = vsyncpa [#allocation3], 0  ;;  %s657_s0 = inlined_call_operand.vmem [shape: bf16[16,16], index: 0, kind: input, shape index: {}]   ;;  %s658_s1 = inlined_call_operand.vmem [shape: bf16[16,128], index: 1, kind: input, shape index: {}]   ;;  %s659_s2 = inlined_call_operand.vmem [shape: f32[1,128], index: 2, kind: input, shape index: {}]   ;;  %s660_s3 = inlined_call_operand.hbm [shape: bf16[128,128], index: 3, kind: input, shape index: {}]   ;;  %s661_s4 = inlined_call_operand.vmem [shape: f32[1,128], index: 4, kind: input, shape index: {}]   ;;  %s662_s5 = inlined_call_operand.hbm [shape: bf16[128,128], index: 5, kind: input, shape index: {}]   ;;  %s663_s6 = inlined_call_operand.vmem [shape: f32[1,128], index: 6, kind: input, shape index: {}]   ;;  %s664_s7 = inlined_call_operand.vmem [shape: f32[16,128], index: 7, kind: output, shape index: {}]  }
   0x1   :  { %13 = vsyncpa [#allocation5], 0  ;;  %s546_s24 = smov [#allocation2]   ;;  %s498_s28 = scalar_lea.hbm %s660_s3, 1024 }
   0x2   :  { %s25_s25 = sshll.u32 %s546_s24, 4  ;;  %p499_p0 = scmp.ne.s32.totalorder %s660_s3, %s498_s28  ;;  %s26_s25 = int_to_ptr.vmem [resolvable:$true] %s25_s25 }
   0x3   :  { %p502_p1 = scmp.lt.u32.totalorder %s498_s28, %s660_s3 }
   0x5   :  { %p504_p2 = pnand %p502_p1, %p499_p0 }
   0x7   :  { %507 = shalt.err (!%p504_p2)
}
   0x8   :  { %s508_s10 = scalar_lea.vmem %s26_s25, 1024  ;;  %p513_p4 = scmp.lt.s32.totalorder %s26_s25, %s26_s25 }
   0x9   :  { %p509_p3 = scmp.ne.s32.totalorder %s26_s25, %s508_s10  ;;  %p514_p5 = scmp.lt.s32.totalorder %s508_s10, %s508_s10 }
   0xb   :  { %p515_p6 = por %p514_p5, %p513_p4 }
   0xd   :  { %p516_p7 = pnand %p515_p6, %p509_p3 }
   0xf   :  { %519 = shalt.err (!%p516_p7)
}
  0x10   :  { %s547_s11 = smov 64   ;;  %s548_s12 = smov 4  }
  0x11   :  { %31 = dma.hbm_to_vmem [thread:$0]  %s660_s3, 1024, %s26_s25, [#allocation3], %s547_s11, %s547_s11, %s548_s12  }
  0x12   :  { %s549_s15 = smov [#allocation4]   ;;  %s520_s19 = scalar_lea.hbm %s662_s5, 1024 }
  0x13   :  { %s39_s16 = sshll.u32 %s549_s15, 4  ;;  %p521_p8 = scmp.ne.s32.totalorder %s662_s5, %s520_s19  ;;  %s40_s16 = int_to_ptr.vmem [resolvable:$true] %s39_s16 }
  0x14   :  { %p524_p9 = scmp.lt.u32.totalorder %s520_s19, %s662_s5 }
  0x16   :  { %p526_p10 = pnand %p524_p9, %p521_p8 }
  0x18   :  { %529 = shalt.err (!%p526_p10)
}
  0x19   :  { %s530_s24 = scalar_lea.vmem %s40_s16, 1024  ;;  %p535_p12 = scmp.lt.s32.totalorder %s40_s16, %s40_s16 }
  0x1a   :  { %p531_p11 = scmp.ne.s32.totalorder %s40_s16, %s530_s24  ;;  %p536_p13 = scmp.lt.s32.totalorder %s530_s24, %s530_s24 }
  0x1c   :  { %p537_p0 = por %p536_p13, %p535_p12 }
  0x1e   :  { %p538_p1 = pnand %p537_p0, %p531_p11 }
  0x20   :  { %541 = shalt.err (!%p538_p1)
}
  0x21   :  { %45 = dma.hbm_to_vmem [thread:$0]  %s662_s5, 1024, %s40_s16, [#allocation5], %s547_s11, %s547_s11, %s548_s12  }
  0x22   :  { %542 = dma.done.wait [#allocation3], 1024  }
  0x23   :  { %543 = vsyncadd [#allocation3], 4294966272 }
  0x24   :  { %544 = dma.done.wait [#allocation5], 1024  }
  0x25   :  { %545 = vsyncadd [#allocation5], 4294966272  ;;  %v550_v0 = vmov 0.0   ;;  %vm551_vm0 = vmmov 0   ;;  %v472_v1 = vld [vmem:[%s658_s1] sm:$0xff]   ;;  %vm77_vm1 = vcmask 130048  }
  0x26   :  { %420 = vmatprep.subr.bf16.mxu0 %v550_v0  ;;  %422 = vmatprep.mubr.msk.bf16.mxu0 %vm551_vm0, %v550_v0  ;;  %v473_v2 = vld [vmem:[%s657_s0] sm:$0xff]   ;;  %v475_v4 = vld [vmem:[#allocation2 + $0x8] sm:$0xff]   ;;  %v476_v5 = vld [vmem:[#allocation2 + $0x10] sm:$0xff]  }
  0x27   :  { %426 = vmatprep.subr.bf16.mxu1 %v550_v0  ;;  %442 = vmatprep.mubr.msk.bf16.mxu1 %vm551_vm0, %v550_v0  ;;  %v474_v3 = vld [vmem:[#allocation2] sm:$0xff]   ;;  %v477_v6 = vld [vmem:[#allocation2 + $0x18] sm:$0xff]   ;;  %v479_v8 = vld [vmem:[#allocation2 + $0x28] sm:$0xff]  }
  0x28   :  { %421 = vmatpush3.bf16.msra.mxu0 %v472_v1  ;;  %427 = vmatpush3.bf16.msra.mxu1 %v474_v3  ;;  %v478_v7 = vld [vmem:[#allocation2 + $0x20] sm:$0xff]   ;;  %v480_v9 = vld [vmem:[#allocation2 + $0x30] sm:$0xff]   ;;  %v481_v10 = vld [vmem:[#allocation2 + $0x38] sm:$0xff]  }
  0x29   :  { %446 = vmatprep.subr.bf16.mxu0 %v550_v0  ;;  %428 = vmatprep.subr.bf16.mxu1 %v550_v0  ;;  %v482_v11 = vld [vmem:[#allocation4] sm:$0xff]   ;;  %v483_v12 = vld [vmem:[#allocation4 + $0x8] sm:$0xff]   ;;  %v484_v13 = vld [vmem:[#allocation4 + $0x10] sm:$0xff]  }
  0x2a   :  { %v485_v14 = vld [vmem:[#allocation4 + $0x18] sm:$0xff]   ;;  %v486_v15 = vld [vmem:[#allocation4 + $0x20] sm:$0xff]   ;;  %v487_v16 = vld [vmem:[#allocation4 + $0x28] sm:$0xff]  }
  0x2b   :  { %423 = vmatmul.mubr.msk.bf16.vlgmr.msra.gmra.mrb[0].mxu0 %vm77_vm1, %v473_v2  ;;  %v378_v17 = vld [vmem:[%s659_s2] ss:$0 sm:$0xff]  ;;  %v488_v27 = vld [vmem:[#allocation4 + $0x30] sm:$0xff]   ;;  %v489_v28 = vld [vmem:[#allocation4 + $0x38] sm:$0xff]  }
  0x2c   :  { %462 = vmatprep.mubr.msk.bf16.mxu0 %vm551_vm0, %v550_v0  ;;  %429 = vmatpush3.bf16.msra.mxu1 %v475_v4  ;;  %v382_v29 = vld [vmem:[%s661_s4] ss:$0 sm:$0xff] }
  0x2d   :  { %430 = vmatprep.subr.bf16.mxu1 %v550_v0  ;;  %447 = vmatpush3.bf16.msra.mxu0 %v482_v11  ;;  %v391_v39 = vld [vmem:[%s663_s6] ss:$0 sm:$0xff] }
  0x2e   :  { %448 = vmatprep.subr.bf16.mxu0 %v550_v0 }
  0x30   :  { %431 = vmatpush3.bf16.msra.mxu1 %v476_v5 }
  0x31   :  { %432 = vmatprep.subr.bf16.mxu1 %v550_v0  ;;  %449 = vmatpush3.bf16.msra.mxu0 %v483_v12 }
  0x32   :  { %450 = vmatprep.subr.bf16.mxu0 %v550_v0 }
  0x34   :  { %433 = vmatpush3.bf16.msra.mxu1 %v477_v6 }
  0x35   :  { %434 = vmatprep.subr.bf16.mxu1 %v550_v0  ;;  %451 = vmatpush3.bf16.msra.mxu0 %v484_v13 }
  0x36   :  { %452 = vmatprep.subr.bf16.mxu0 %v550_v0 }
  0x38   :  { %435 = vmatpush3.bf16.msra.mxu1 %v478_v7 }
  0x39   :  { %436 = vmatprep.subr.bf16.mxu1 %v550_v0  ;;  %453 = vmatpush3.bf16.msra.mxu0 %v485_v14 }
  0x3a   :  { %454 = vmatprep.subr.bf16.mxu0 %v550_v0 }
  0x3c   :  { %437 = vmatpush3.bf16.msra.mxu1 %v479_v8 }
  0x3d   :  { %438 = vmatprep.subr.bf16.mxu1 %v550_v0  ;;  %455 = vmatpush3.bf16.msra.mxu0 %v486_v15 }
  0x3e   :  { %456 = vmatprep.subr.bf16.mxu0 %v550_v0 }
  0x40   :  { %439 = vmatpush3.bf16.msra.mxu1 %v480_v9 }
  0x41   :  { %440 = vmatprep.subr.bf16.mxu1 %v550_v0  ;;  %457 = vmatpush3.bf16.msra.mxu0 %v487_v16 }
  0x42   :  { %458 = vmatprep.subr.bf16.mxu0 %v550_v0 }
  0x44   :  { %441 = vmatpush3.bf16.msra.mxu1 %v481_v10 }
  0x45   :  { %459 = vmatpush3.bf16.msra.mxu0 %v488_v27 }
  0x46   :  { %460 = vmatprep.subr.bf16.mxu0 %v550_v0 }
  0x49   :  { %461 = vmatpush3.bf16.msra.mxu0 %v489_v28 }
  0xfe   :  { %v115_v18 = vpop.f32.mrb[0].mxu0 }
  0xff   :  { %v116_v19 = vadd.f32 %v378_v17, %v115_v18  ;;  %v424_v20 = vpop.f32.mrb[1].mxu0 }
 0x100   :  { %v118_v21 = vpop.f32.mrb[2].mxu0 }
 0x101   :  { %v119_v22 = vadd.f32 %v378_v17, %v118_v21  ;;  %v425_v23 = vpop.f32.mrb[3].mxu0  ;;  %v122_v24 = vmax.f32 %v116_v19, 0.0 }
 0x103   :  { %v123_v25 = vmax.f32 %v119_v22, 0.0 }
 0x105   :  { %v124_v26 = vpack.c.bf16 %v123_v25, %v122_v24 }
 0x107   :  { %443 = vmatmul.mubr.bf16.vlgmr.msra.gmra.mrb[0].mxu1 %v124_v26 }
 0x1da   :  { %v230_v30 = vpop.f32.mrb[0].mxu1 }
 0x1db   :  { %v231_v31 = vadd.f32 %v382_v29, %v230_v30  ;;  %v444_v32 = vpop.f32.mrb[1].mxu1 }
 0x1dc   :  { %v233_v33 = vpop.f32.mrb[2].mxu1 }
 0x1dd   :  { %v234_v34 = vadd.f32 %v382_v29, %v233_v33  ;;  %v445_v35 = vpop.f32.mrb[3].mxu1  ;;  %v237_v36 = vmax.f32 %v231_v31, 0.0 }
 0x1df   :  { %v238_v37 = vmax.f32 %v234_v34, 0.0 }
 0x1e1   :  { %v239_v38 = vpack.c.bf16 %v238_v37, %v237_v36 }
 0x1e3   :  { %463 = vmatmul.mubr.bf16.vlgmr.msra.gmra.mrb[4].mxu0 %v239_v38 }
 0x2b6   :  { %v345_v40 = vpop.f32.mrb[4].mxu0 }
 0x2b7   :  { %v346_v41 = vadd.f32 %v391_v39, %v345_v40  ;;  %v464_v42 = vpop.f32.mrb[5].mxu0 }
 0x2b8   :  { %v348_v43 = vpop.f32.mrb[6].mxu0 }
 0x2b9   :  { %352 = vmax.xlane.f32.xlu0 %v346_v41  ;;  %v465_v44 = vpop.f32.mrb[7].mxu0  ;;  %v349_v45 = vadd.f32 %v391_v39, %v348_v43 }
 0x2bd   :  { %354 = vmax.xlane.f32.xlu0 %v349_v45 }
 0x346   :  { %v353_v46 = vpop.xlane.xlu0 %352 }
 0x347   :  { %v356_v47 = vsub.f32 %v346_v41, %v353_v46 }
 0x349   :  { %v358_v48 = vmul.f32 1.442695, %v356_v47 }
 0x34a   :  { %v355_v49 = vpop.xlane.xlu0 %354 }
 0x34b   :  { %490 = vpow2.f32 %v358_v48  ;;  %v357_v50 = vsub.f32 %v349_v45, %v355_v49 }
 0x34d   :  { %v360_v51 = vmul.f32 1.442695, %v357_v50 }
 0x34f   :  { %492 = vpow2.f32 %v360_v51 }
 0x355   :  { %v491_v52 = vpop.eup %490 }
 0x356   :  { %362 = vadd.xlane.f32.xlu1 %v491_v52 }
 0x359   :  { %v493_v53 = vpop.eup %492 }
 0x35a   :  { %364 = vadd.xlane.f32.xlu1 %v493_v53 }
 0x3e3   :  { %v363_v54 = vpop.xlane.xlu1 %362 }
 0x3e4   :  { %494 = vrcp.f32 %v363_v54 }
 0x3e7   :  { %v365_v55 = vpop.xlane.xlu1 %364 }
 0x3e8   :  { %496 = vrcp.f32 %v365_v55 }
 0x3ee   :  { %v495_v56 = vpop.eup %494 }
 0x3ef   :  { %v367_v57 = vmul.f32 %v495_v56, %v491_v52 }
 0x3f1   :  { %370 = vst [vmem:[%s664_s7] sm:$0xff] %v367_v57 }
 0x3f2   :  { %v497_v58 = vpop.eup %496 }
 0x3f3   :  { %v369_v59 = vmul.f32 %v497_v58, %v493_v53 }
 0x3f5   :  { %371 = vst [vmem:[%s664_s7 + $0x8] sm:$0xff] %v369_v59 }
 0x3f6   :  { %376 = vsyncpa [#allocation3], 1 }
 0x3f7   :  { %377 = vsyncpa [#allocation5], 1 }

</bundles_post_ra>
